<compile_context>
chip_gen: v7x
topology: tpu7x:2x2x1
jax: 0.10.0
libtpu: 0.0.40
codegen_flags: <defaults>
</compile_context>

<pallas_src>
import math
from functools import partial

import jax
import jax.numpy as jnp
from jax.experimental import pallas as pl
from jax.experimental.pallas import tpu as pltpu

_GELU_C = math.sqrt(2.0 / math.pi)


def _round_up(x, m):
    return ((x + m - 1) // m) * m


def _ffn_kernel(x_ref, w1_ref, b1_ref, w2_ref, b2_ref, o_ref, acc_ref, *, compute_dtype):
    # x_ref:  (1, E, TN)   input tile (tokens on lanes)
    # w1_ref: (FT, E)      c_fc weight chunk   (compute_dtype)
    # b1_ref: (FT, 1)      c_fc bias chunk     (f32)
    # w2_ref: (E, FT)      c_proj weight chunk (compute_dtype)
    # b2_ref: (E, 1)       c_proj bias         (f32)
    # o_ref:  (1, E, TN)   output tile
    # acc_ref:(E, TN)      f32 accumulator scratch (persists across the F axis)
    f = pl.program_id(2)
    nf = pl.num_programs(2)

    @pl.when(f == 0)
    def _():
        acc_ref[...] = jnp.zeros_like(acc_ref)

    x = x_ref[0].astype(compute_dtype)                                   # (E, TN)

    # c_fc chunk: (FT, E) @ (E, TN) -> (FT, TN), f32 accumulation on the MXU
    h = jnp.dot(w1_ref[...], x, preferred_element_type=jnp.float32)
    h = h + b1_ref[...]                                                  # bias (FT, 1)

    # new_gelu (tanh approximation), f32 epilogue
    h = 0.5 * h * (1.0 + jnp.tanh(_GELU_C * (h + 0.044715 * (h * h * h))))

    # Dropout: identity at inference time.
    # TODO(synk): training-mode dropout (p=0.1) would need pltpu.prng_* masking.

    # c_proj chunk: (E, FT) @ (FT, TN) -> (E, TN), accumulated over F chunks in f32
    acc_ref[...] += jnp.dot(w2_ref[...], h.astype(compute_dtype),
                            preferred_element_type=jnp.float32)

    @pl.when(f == nf - 1)
    def _():
        o_ref[0] = (acc_ref[...] + b2_ref[...]).astype(o_ref.dtype)


def ffn_pallas(x_nchw, w1, b1, w2, b2, *, token_tile=512, f_tile=512,
               compute_dtype=jnp.bfloat16):
    """x_nchw: (B, E, H, W). w1: (F, E, 1, 1), b1: (F,), w2: (E, F, 1, 1), b2: (E,)."""
    B, E, H, W = x_nchw.shape
    F = w1.shape[0]
    HW = H * W

    # --- tile sizing (lane-aligned, ragged-safe via zero padding) ---
    tn = _round_up(min(max(token_tile, 1), _round_up(HW, 128)), 128)
    hw_pad = _round_up(HW, tn)
    ft = _round_up(min(max(f_tile, 1), _round_up(F, 128)), 128)
    f_pad = _round_up(F, ft)

    # --- operand prep (reshapes only; no HBM transposes) ---
    x_t = x_nchw.reshape(B, E, HW)
    if hw_pad != HW:
        x_t = jnp.pad(x_t, ((0, 0), (0, 0), (0, hw_pad - HW)))

    w1_m = w1.reshape(F, E)          # (F, E): used directly as c_fc matrix
    w2_m = w2.reshape(E, F)          # (E, F): used directly as c_proj matrix
    b1_p = b1
    if f_pad != F:                   # zero-pad F: padded rows/cols contribute exactly 0
        w1_m = jnp.pad(w1_m, ((0, f_pad - F), (0, 0)))
        w2_m = jnp.pad(w2_m, ((0, 0), (0, f_pad - F)))
        b1_p = jnp.pad(b1, (0, f_pad - F))
    w1_m = w1_m.astype(compute_dtype)
    w2_m = w2_m.astype(compute_dtype)
    b1_c = b1_p.reshape(f_pad, 1).astype(jnp.float32)
    b2_c = b2.reshape(E, 1).astype(jnp.float32)

    grid = (B, hw_pad // tn, f_pad // ft)

    # --- VMEM budget (explicit, with headroom; stays well under v7x's 64 MiB) ---
    in_isz = jnp.dtype(x_nchw.dtype).itemsize
    c_isz = jnp.dtype(compute_dtype).itemsize
    vmem_est = (
        2 * E * tn * in_isz          # x tile (double-buffered)
        + 2 * E * tn * in_isz        # out tile (double-buffered)
        + 2 * ft * E * c_isz         # W1 chunk (double-buffered)
        + 2 * E * ft * c_isz         # W2 chunk (double-buffered)
        + 2 * (ft + E) * 128 * 4     # biases (lane-padded)
        + E * tn * 4                 # f32 accumulator scratch
        + 4 * ft * tn * 4            # f32 intermediate h + GELU temporaries
    )
    vmem_limit = int(min(56 * 1024 * 1024, max(32 * 1024 * 1024, (vmem_est * 3) // 2)))

    n_tokens = B * HW
    cost = pl.CostEstimate(
        flops=4 * n_tokens * E * F,                 # two matmuls
        transcendentals=n_tokens * F,               # tanh
        bytes_accessed=(x_nchw.size * in_isz + n_tokens * E * in_isz
                        + 2 * E * F * c_isz + (E + F) * 4),
    )

    out_t = pl.pallas_call(
        partial(_ffn_kernel, compute_dtype=compute_dtype),
        out_shape=jax.ShapeDtypeStruct((B, E, hw_pad), x_nchw.dtype),
        grid_spec=pltpu.PrefetchScalarGridSpec(
            num_scalar_prefetch=0,
            grid=grid,
            in_specs=[
                pl.BlockSpec((1, E, tn), lambda b, t, f: (b, 0, t)),   # x tile
                pl.BlockSpec((ft, E), lambda b, t, f: (f, 0)),         # W1 chunk
                pl.BlockSpec((ft, 1), lambda b, t, f: (f, 0)),         # b1 chunk
                pl.BlockSpec((E, ft), lambda b, t, f: (0, f)),         # W2 chunk
                pl.BlockSpec((E, 1), lambda b, t, f: (0, 0)),          # b2
            ],
            out_specs=pl.BlockSpec((1, E, tn), lambda b, t, f: (b, 0, t)),
            scratch_shapes=[pltpu.VMEM((E, tn), jnp.float32)],
        ),
        compiler_params=pltpu.CompilerParams(
            dimension_semantics=("parallel", "parallel", "arbitrary"),
            vmem_limit_bytes=vmem_limit,
        ),
        cost_estimate=cost,
    )(x_t, w1_m, b1_c, w2_m, b2_c)

    if hw_pad != HW:
        out_t = out_t[:, :, :HW]
    return out_t.reshape(B, E, H, W)


# ----------------------------- pure-JAX reference -----------------------------

def _new_gelu_ref(x):
    return 0.5 * x * (1.0 + jnp.tanh(_GELU_C * (x + 0.044715 * jnp.power(x, 3.0))))


def _ffn_ref(x_nchw, w1, b1, w2, b2, *, compute_dtype=jnp.bfloat16):
    B, E, H, W = x_nchw.shape
    F = w1.shape[0]
    x_t = x_nchw.reshape(B, E, H * W).astype(compute_dtype)
    w1_m = w1.reshape(F, E).astype(compute_dtype)
    w2_m = w2.reshape(E, F).astype(compute_dtype)
    h = jnp.einsum("fe,bet->bft", w1_m, x_t, preferred_element_type=jnp.float32)
    h = h + b1.reshape(1, F, 1)
    h = _new_gelu_ref(h)
    y = jnp.einsum("ef,bft->bet", w2_m, h.astype(compute_dtype),
                   preferred_element_type=jnp.float32)
    y = y + b2.reshape(1, E, 1)
    return y.reshape(B, E, H, W).astype(x_nchw.dtype)


if __name__ == "__main__":
    # Small shapes that still exercise multiple batch / token / F-chunk grid steps.
    B, E, F, H, W = 2, 32, 256, 16, 16

    key = jax.random.PRNGKey(0)
    kx, k1, kb1, k2, kb2 = jax.random.split(key, 5)

    x = jax.random.normal(kx, (B, E, H, W), dtype=jnp.float32)

    # Conv2d 1x1 weight shapes: (out, in, 1, 1).
    w1 = jax.random.normal(k1, (F, E, 1, 1), dtype=jnp.float32) * (1.0 / math.sqrt(E))
    b1 = jax.random.normal(kb1, (F,), dtype=jnp.float32) * 0.02
    w2 = jax.random.normal(k2, (E, F, 1, 1), dtype=jnp.float32) * (1.0 / math.sqrt(F))
    b2 = jax.random.normal(kb2, (E,), dtype=jnp.float32) * 0.02

    out = ffn_pallas(x, w1, b1, w2, b2, token_tile=128, f_tile=128)
    out = jax.block_until_ready(out)

    ref = _ffn_ref(x, w1, b1, w2, b2, compute_dtype=jnp.bfloat16)
    assert out.shape == (B, E, H, W), out.shape
    max_err = float(jnp.max(jnp.abs(out - ref)))
    assert jnp.allclose(out, ref, atol=2e-3, rtol=2e-3), max_err

    print("KERNEL_OK")
</pallas_src>

<mosaic_0001>
module attributes {stable_mosaic.version = 11 : i64} {
  func.func @_ffn_kernel(%arg0: i32, %arg1: i32, %arg2: i32, %arg3: memref<1x32x128xf32, #tpu.memory_space<vmem>>, %arg4: memref<128x32xbf16, #tpu.memory_space<vmem>>, %arg5: memref<128x1xf32, #tpu.memory_space<vmem>>, %arg6: memref<32x128xbf16, #tpu.memory_space<vmem>>, %arg7: memref<32x1xf32, #tpu.memory_space<vmem>>, %arg8: memref<1x32x128xf32, #tpu.memory_space<vmem>>, %arg9: memref<32x128xf32, #tpu.memory_space<vmem>>) attributes {dimension_semantics = [#tpu.dimension_semantics<parallel>, #tpu.dimension_semantics<parallel>, #tpu.dimension_semantics<arbitrary>], iteration_bounds = array<i64: 2, 2, 2>, scalar_prefetch = 0 : i64, scratch_operands = 1 : i64, tpu.core_type = #tpu.core_type<tc>, window_params = [{transform_indices = @transform_0, window_bounds = array<i64: 1, 32, 128>}, {transform_indices = @transform_1, window_bounds = array<i64: 128, 32>}, {transform_indices = @transform_2, window_bounds = array<i64: 128, 1>}, {transform_indices = @transform_3, window_bounds = array<i64: 32, 128>}, {pipeline_mode = #tpu.pipeline_mode<synchronous>, transform_indices = @transform_4, window_bounds = array<i64: 32, 1>}, {transform_indices = @transform_5, window_bounds = array<i64: 1, 32, 128>}]} {
    %c0_i32 = arith.constant 0 : i32
    %0 = arith.cmpi eq, %arg2, %c0_i32 : i32
    %1 = arith.extui %0 : i1 to i32
    %c0_i32_0 = arith.constant 0 : i32
    %2 = arith.cmpi ne, %1, %c0_i32_0 : i32
    scf.if %2 {
      %cst_19 = arith.constant 0.000000e+00 : f32
      %33 = vector.broadcast %cst_19 : f32 to vector<32x128xf32>
      %c0_20 = arith.constant 0 : index
      %c0_21 = arith.constant 0 : index
      %34 = vector.load %arg9[%c0_20, %c0_21] : memref<32x128xf32, #tpu.memory_space<vmem>>, vector<32x128xf32>
      tpu.vector_store %arg9[%c0_20, %c0_21], %33 {strides = array<i32>} : memref<32x128xf32, #tpu.memory_space<vmem>>, vector<32x128xf32>,
    } else {
    }
    %c0 = arith.constant 0 : index
    %c0_1 = arith.constant 0 : index
    %c0_2 = arith.constant 0 : index
    %3 = vector.load %arg3[%c0, %c0_1, %c0_2] : memref<1x32x128xf32, #tpu.memory_space<vmem>>, vector<1x32x128xf32>
    %4 = vector.shape_cast %3 : vector<1x32x128xf32> to vector<32x128xf32>
    %5 = arith.truncf %4 : vector<32x128xf32> to vector<32x128xbf16>
    %c0_3 = arith.constant 0 : index
    %c0_4 = arith.constant 0 : index
    %6 = vector.load %arg4[%c0_3, %c0_4] : memref<128x32xbf16, #tpu.memory_space<vmem>>, vector<128x32xbf16>
    %cst = arith.constant dense<0.000000e+00> : vector<128x128xf32>
    %7 = tpu.matmul %6, %5, %cst {dimension_numbers = #tpu.dot_dimension_numbers<[1], [0], [0], [1], [0, 0, 1, 1], [], []>} : vector<128x32xbf16>, vector<32x128xbf16>, vector<128x128xf32> -> vector<128x128xf32>
    %c0_5 = arith.constant 0 : index
    %c0_6 = arith.constant 0 : index
    %8 = vector.load %arg5[%c0_5, %c0_6] : memref<128x1xf32, #tpu.memory_space<vmem>>, vector<128x1xf32>
    %9 = vector.broadcast %8 : vector<128x1xf32> to vector<128x128xf32>
    %10 = arith.addf %7, %9 : vector<128x128xf32>
    %cst_7 = arith.constant 5.000000e-01 : f32
    %11 = vector.broadcast %cst_7 : f32 to vector<128x128xf32>
    %12 = arith.mulf %11, %10 : vector<128x128xf32>
    %13 = arith.mulf %10, %10 : vector<128x128xf32>
    %14 = arith.mulf %13, %10 : vector<128x128xf32>
    %cst_8 = arith.constant 4.471500e-02 : f32
    %15 = vector.broadcast %cst_8 : f32 to vector<128x128xf32>
    %16 = arith.mulf %15, %14 : vector<128x128xf32>
    %17 = arith.addf %10, %16 : vector<128x128xf32>
    %cst_9 = arith.constant 0.797884583 : f32
    %18 = vector.broadcast %cst_9 : f32 to vector<128x128xf32>
    %19 = arith.mulf %18, %17 : vector<128x128xf32>
    %20 = math.tanh %19 : vector<128x128xf32>
    %cst_10 = arith.constant 1.000000e+00 : f32
    %21 = vector.broadcast %cst_10 : f32 to vector<128x128xf32>
    %22 = arith.addf %21, %20 : vector<128x128xf32>
    %23 = arith.mulf %12, %22 : vector<128x128xf32>
    %c0_11 = arith.constant 0 : index
    %c0_12 = arith.constant 0 : index
    %24 = vector.load %arg9[%c0_11, %c0_12] : memref<32x128xf32, #tpu.memory_space<vmem>>, vector<32x128xf32>
    %c0_13 = arith.constant 0 : index
    %c0_14 = arith.constant 0 : index
    %25 = vector.load %arg6[%c0_13, %c0_14] : memref<32x128xbf16, #tpu.memory_space<vmem>>, vector<32x128xbf16>
    %26 = arith.truncf %23 : vector<128x128xf32> to vector<128x128xbf16>
    %cst_15 = arith.constant dense<0.000000e+00> : vector<32x128xf32>
    %27 = tpu.matmul %25, %26, %cst_15 {dimension_numbers = #tpu.dot_dimension_numbers<[1], [0], [0], [1], [0, 0, 1, 1], [], []>} : vector<32x128xbf16>, vector<128x128xbf16>, vector<32x128xf32> -> vector<32x128xf32>
    %28 = arith.addf %24, %27 : vector<32x128xf32>
    %c0_16 = arith.constant 0 : index
    %c0_17 = arith.constant 0 : index
    %29 = vector.load %arg9[%c0_16, %c0_17] : memref<32x128xf32, #tpu.memory_space<vmem>>, vector<32x128xf32>
    tpu.vector_store %arg9[%c0_16, %c0_17], %28 {strides = array<i32>} : memref<32x128xf32, #tpu.memory_space<vmem>>, vector<32x128xf32>,
    %c1_i32 = arith.constant 1 : i32
    %30 = arith.cmpi eq, %arg2, %c1_i32 : i32
    %31 = arith.extui %30 : i1 to i32
    %c0_i32_18 = arith.constant 0 : i32
    %32 = arith.cmpi ne, %31, %c0_i32_18 : i32
    scf.if %32 {
      %c0_19 = arith.constant 0 : index
      %c0_20 = arith.constant 0 : index
      %33 = vector.load %arg9[%c0_19, %c0_20] : memref<32x128xf32, #tpu.memory_space<vmem>>, vector<32x128xf32>
      %c0_21 = arith.constant 0 : index
      %c0_22 = arith.constant 0 : index
      %34 = vector.load %arg7[%c0_21, %c0_22] : memref<32x1xf32, #tpu.memory_space<vmem>>, vector<32x1xf32>
      %35 = vector.broadcast %34 : vector<32x1xf32> to vector<32x128xf32>
      %36 = arith.addf %33, %35 : vector<32x128xf32>
      %c0_23 = arith.constant 0 : index
      %c0_24 = arith.constant 0 : index
      %c0_25 = arith.constant 0 : index
      %37 = vector.load %arg8[%c0_23, %c0_24, %c0_25] : memref<1x32x128xf32, #tpu.memory_space<vmem>>, vector<1x32x128xf32>
      %38 = vector.shape_cast %37 : vector<1x32x128xf32> to vector<32x128xf32>
      %39 = vector.shape_cast %36 : vector<32x128xf32> to vector<1x32x128xf32>
      tpu.vector_store %arg8[%c0_23, %c0_24, %c0_25], %39 {strides = array<i32>} : memref<1x32x128xf32, #tpu.memory_space<vmem>>, vector<1x32x128xf32>,
    } else {
    }
    return
  }
  func.func @transform_0(%arg0: i32, %arg1: i32, %arg2: i32) -> (i32, i32, i32) {
    %c0_i32 = arith.constant 0 : i32
    %c0_i32_0 = arith.constant 0 : i32
    return %arg0, %c0_i32, %arg1 : i32, i32, i32
  }
  func.func @transform_1(%arg0: i32, %arg1: i32, %arg2: i32) -> (i32, i32) {
    %c0_i32 = arith.constant 0 : i32
    %c0_i32_0 = arith.constant 0 : i32
    return %arg2, %c0_i32 : i32, i32
  }
  func.func @transform_2(%arg0: i32, %arg1: i32, %arg2: i32) -> (i32, i32) {
    %c0_i32 = arith.constant 0 : i32
    %c0_i32_0 = arith.constant 0 : i32
    return %arg2, %c0_i32 : i32, i32
  }
  func.func @transform_3(%arg0: i32, %arg1: i32, %arg2: i32) -> (i32, i32) {
    %c0_i32 = arith.constant 0 : i32
    %c0_i32_0 = arith.constant 0 : i32
    return %c0_i32, %arg2 : i32, i32
  }
  func.func @transform_4(%arg0: i32, %arg1: i32, %arg2: i32) -> (i32, i32) {
    %c0_i32 = arith.constant 0 : i32
    %c0_i32_0 = arith.constant 0 : i32
    %c0_i32_1 = arith.constant 0 : i32
    return %c0_i32, %c0_i32_0 : i32, i32
  }
  func.func @transform_5(%arg0: i32, %arg1: i32, %arg2: i32) -> (i32, i32, i32) {
    %c0_i32 = arith.constant 0 : i32
    %c0_i32_0 = arith.constant 0 : i32
    return %arg0, %c0_i32, %arg1 : i32, i32, i32
  }
}

</mosaic_0001>

<bundles_post_ra>
// kernel: tpu_custom_call.1
= control target key start
LH: loop header
LB: loop body
LE: loop exit
PB: predicated region body
PF: predicated region fallthrough
CT: control target
= control target key end

     0   :  { %s1916_s0 = inlined_call_operand.vmem [shape: f32[2,32,256], index: 0, kind: input, shape index: {}]   ;;  %s1917_s1 = inlined_call_operand.vmem [shape: bf16[256,32], index: 1, kind: input, shape index: {}]   ;;  %s1918_s2 = inlined_call_operand.vmem [shape: f32[256,1], index: 2, kind: input, shape index: {}]   ;;  %s1919_s3 = inlined_call_operand.vmem [shape: bf16[32,256], index: 3, kind: input, shape index: {}]   ;;  %s1920_s4 = inlined_call_operand.vmem [shape: f32[32,1], index: 4, kind: input, shape index: {}]   ;;  %s1921_s5 = inlined_call_operand.hbm [shape: f32[2,32,256], index: 5, kind: output, shape index: {}]  }
   0x1   :  { %1927 = sst [smem:[#allocation13_spill]] %s1916_s0 }
   0x2   :  { %1928 = sst [smem:[#allocation14_spill]] %s1919_s3 }
   0x3   :  { %10 = vsyncpa [#allocation6], 0 }
   0x4   :  { %12 = vsyncpa [#allocation6 + $0x1], 0  ;;  %s1537_s18 = smov 0   ;;  %s1539_s19 = smov 0  }
   0x5   :  { %s1541_s20 = smov 0   ;;  %s1543_s21 = smov 0  }
   0x6   :  { %s1545_s22 = smov 0   ;;  %s1547_s23 = smov 0  }
   0x7   :  { %s1549_s24 = smov 0   ;;  %s1551_s25 = smov 0  }
   0x8   :  { %s1553_s26 = smov 0   ;;  %s1555_s27 = smov 0  }
   0x9   :  { %s1557_s28 = smov 0   ;;  %s1559_s29 = smov 0  }
   0xa LB: > { %s1115_s30 = sadd.s32 4294967295, %s1498_s29   ;;  %s1116_s6 = sadd.s32 4294967294, %s1498_s29   ;;  %s1498_s29 = sphi %s1559_s29, %s18_s29   ;;  %s1494_s28 = sphi %s1557_s28, %s1956_s28   ;;  %s1490_s27 = sphi %s1555_s27, %s1955_s27   ;;  %s1486_s26 = sphi %s1553_s26, %s1954_s26   ;;  %s1482_s25 = sphi %s1551_s25, %s1953_s25   ;;  %s1478_s24 = sphi %s1549_s24, %s1952_s24   ;;  %s1474_s23 = sphi %s1547_s23, %s1951_s23   ;;  %s1470_s22 = sphi %s1545_s22, %s1950_s22   ;;  %s1466_s21 = sphi %s1543_s21, %s1949_s21   ;;  %s1462_s20 = sphi %s1541_s20, %s1948_s20   ;;  %s1458_s19 = sphi %s1539_s19, %s1947_s19   ;;  %s1454_s18 = sphi %s1537_s18, %s1946_s18  }
   0xb   : > { %s30_s7 = sadd.s32 1, %s1486_s26  ;;  %s33_s8 = sadd.s32 1, %s1490_s27 }
   0xc   : > { %p31_p0 = scmp.ge.s32.totalorder %s30_s7, 2  ;;  %s37_s9 = sadd.s32 1, %s1494_s28 }
   0xd   : > { %s46_s10 = sadd.s32 1, %s1470_s22  ;;  %p53_p1 = scmp.ne.s32.totalorder %s1470_s22, %s1466_s21 }
   0xe   : > { %s1958_s7 = smov (%p31_p0, %s30_s7), 0  ;;  %s1960_s8 = smov (!%p31_p0, %s33_s8), %s1490_s27 }
   0xf   : > { %1929 = sst [smem:[#allocation8_spill]] %s1958_s7  ;;  %p54_p2 = scmp.eq.s32.totalorder %s1498_s29, 0 }
  0x10   : > { %s121_s11 = ssub.s32 %s1486_s26, %s1958_s7  ;;  %p35_p3 = scmp.ge.s32.totalorder %s1960_s8, 2 }
  0x11   : > { %p122_p4 = scmp.eq.s32.totalorder %s121_s11, 0  ;;  %p1616_p5 = por %p54_p2, %p53_p1 }
  0x12   : > { %s124_s13 = sadd.s32 1, %s1462_s20  ;;  %s1962_s8 = smov (%p35_p3, %s1960_s8), 0 }
  0x13   : > { %1931 = sst [smem:[#allocation9_spill]] %s1962_s8  ;;  %s1964_s9 = smov (!%p35_p3, %s37_s9), %s1494_s28 }
  0x14   : > { %s42_s14 = ssub.s32 %s1490_s27, %s1962_s8  ;;  %p131_p6 = scmp.ne.s32.totalorder %s1462_s20, %s1458_s19 }
  0x15   : > { %p39_p7 = scmp.ge.s32.totalorder %s1964_s9, 2  ;;  %p184_p8 = scmp.eq.s32.totalorder %s1115_s30, 7 }
  0x16   : > { %s1629_s15 = scalar_select %p122_p4, %s1462_s20, %s124_s13  }
  0x17   : > { %s1966_s9 = smov (%p39_p7, %s1964_s9), 0  ;;  %p1635_p9 = por %p131_p6, %p54_p2 }
  0x18   : > { %1932 = sst [smem:[#allocation10_spill]] %s1629_s15  ;;  %p1642_p10 = por %p184_p8, %p53_p1 }
  0x19   : > { %1933 = sst [smem:[#allocation11_spill]] %s1966_s9  ;;  %s41_s11 = ssub.s32 %s1494_s28, %s1966_s9 }
  0x1a   : > { %p189_p11 = scmp.ne.s32.totalorder %s1466_s21, %s1454_s18  ;;  %s43_s8 = sor.u32 %s42_s14, %s41_s11 }
  0x1b   : > { %p190_p12 = scmp.eq.s32.totalorder %s1116_s6, 7  ;;  %p44_p13 = scmp.eq.s32.totalorder %s43_s8, 0 }
  0x1c   : > { %p1118_p2 = scmp.ge.s32.totalorder %s1498_s29, 8 }
  0x1d   : > { %p1650_p0 = por %p190_p12, %p189_p11 }
  0x1e   : > { %s1655_s13 = scalar_select %p44_p13, %s1470_s22, %s46_s10  }
  0x1f   : > { %s1936_s30 = scalar_select %p1650_p0, 1, 0 }
  0x20   : > { %209 = sbr.rel (%p1118_p2) target bundleno = 63 (0x3f), region = 20 }
  0x21   : > { %1937 = sst [smem:[#allocation12_spill]] %s1936_s30 }
  0x27   : > { %212 = sbr.rel (!%p1616_p5) target bundleno = 51 (0x33), region = 24  ;;  %s214_s9 = sand.u32 (%p1616_p5), 1, %s1470_s22  }
  0x28   : > { %s1120_s7 = sshll.u32 (%p1616_p5), %s1494_s28, 3  ;;  %s1119_s14 = sshll.u32 (%p1616_p5), %s214_s9, 5 }
  0x29   : > { %s218_s6 = sadd.s32 (%p1616_p5), %s1490_s27, %s1120_s7  ;;  %s1938_s0 = sld [smem:[#allocation13_spill]] (%p1616_p5) }
  0x2a   : > { %s1121_s8 = sshll.u32 (%p1616_p5), %s218_s6, 3  ;;  %s216_s10 = scalar_lea.vmem (%p1616_p5), [#allocation3], %s1119_s14 }
  0x2f   : > { %s220_s30 = scalar_lea.vmem %s1938_s0, %s1121_s8 }
  0x30   : > { %v254_v0 = vld [vmem:[%s220_s30] sm:$0xff]  ;;  %v256_v1 = vld [vmem:[%s220_s30 + $0x10] sm:$0xff] }
  0x31   : > { %v258_v2 = vld [vmem:[%s220_s30 + $0x20] sm:$0xff]  ;;  %255 = vst [vmem:[%s216_s10] sm:$0xff] %v254_v0  ;;  %257 = vst [vmem:[%s216_s10 + $0x8] sm:$0xff] %v256_v1  ;;  %v260_v3 = vld [vmem:[%s220_s30 + $0x30] sm:$0xff] }
  0x32   : > { %259 = vst [vmem:[%s216_s10 + $0x10] sm:$0xff] %v258_v2  ;;  %261 = vst [vmem:[%s216_s10 + $0x18] sm:$0xff] %v260_v3 }
  0x33 PF: > { %285 = sbr.rel (!%p1635_p9) target bundleno = 63 (0x3f), region = 70  ;;  %s287_s7 = sand.u32 (%p1635_p9), 1, %s1462_s20  }
  0x34   : > { %s1123_s9 = sshll.u32 (%p1635_p9), %s1486_s26, 2  ;;  %s1122_s12 = sshll.u32 (%p1635_p9), %s287_s7, 4 }
  0x35   : > { %s1939_s3 = sld [smem:[#allocation14_spill]] (%p1635_p9)  ;;  %s289_s14 = scalar_lea.vmem (%p1635_p9), [#allocation4], %s1122_s12 }
  0x3b   : > { %s291_s8 = scalar_lea.vmem %s1939_s3, %s1123_s9 }
  0x3c   : > { %v307_v4 = vld [vmem:[%s291_s8] sm:$0xf]  ;;  %v309_v5 = vld [vmem:[%s291_s8 + $0x8] sm:$0xf]  ;;  %v311_v6 = vld [vmem:[%s291_s8 + $0x10] sm:$0xf] }
  0x3d   : > { %308 = vst [vmem:[%s289_s14] sm:$0xf] %v307_v4  ;;  %310 = vst [vmem:[%s289_s14 + $0x4] sm:$0xf] %v309_v5  ;;  %v313_v7 = vld [vmem:[%s291_s8 + $0x18] sm:$0xf] }
  0x3e   : > { %312 = vst [vmem:[%s289_s14 + $0x8] sm:$0xf] %v311_v6  ;;  %314 = vst [vmem:[%s289_s14 + $0xc] sm:$0xf] %v313_v7 }
  0x3f PF: > { %p1124_p1 = scmp.ge.s32.totalorder %s1498_s29, 1  ;;  %p344_p3 = scmp.lt.s32.totalorder %s1498_s29, 9 }
  0x41   : > { %p345_p4 = pnand %p1124_p1, %p344_p3 }
  0x42   : > { %s1926_s16 = sand.u32 (!%p345_p4), 1, %s1466_s21   ;;  %s358_s30 = sand.u32 (!%p345_p4), 1, %s1458_s19  }
  0x43   : > { %348 = sbr.rel (%p345_p4) target bundleno = 628 (0x274), region = 111  ;;  %s1125_s11 = sshll.u32 (!%p345_p4), %s1926_s16, 5 }
  0x44   : > { %s1679_s10 = sshll.u32 (!%p345_p4), %s358_s30, 4  ;;  %s1128_s7 = sshll.u32 (!%p345_p4), %s1474_s23, 4 }
  0x45   : > { %p400_p5 = scmp.lt.s32.totalorder (!%p345_p4), %s1128_s7, 31  ;;  %s353_s19 = scalar_lea.vmem (!%p345_p4), [#allocation3], %s1125_s11 }
  0x46   : > { %s360_s16 = scalar_lea.vmem (!%p345_p4), [#allocation4], %s1679_s10  ;;  %s1693_s30 = scalar_lea.vmem (!%p345_p4), [#allocation5], %s1125_s11 }
  0x47   : > { %p1132_p6 = scmp.ne.s32.totalorder (!%p345_p4), %s1474_s23, 0 }
  0x4a   : > { %s1968_s7 = smov (!%p400_p5, %s1128_s7), 31  ;;  %415 = sbr.rel (%p1132_p6) target bundleno = 81 (0x51), region = 123 }
  0x4b   : > { %s1129_s9 = sshll.u32 %s1968_s7, 2  ;;  %s1131_s12 = sshll.u32 %s1968_s7, 3  ;;  %v1500_v8 = vmov (!%p1132_p6), 0.0  }
  0x4c   : > { %s1685_s8 = scalar_lea.vmem %s1917_s1, %s1129_s9  ;;  %s1690_s3 = scalar_lea.vmem %s1918_s2, %s1131_s12  ;;  %416 = vst [vmem:[#allocation2] sm:$0xff] (!%p1132_p6), %v1500_v8  ;;  %417 = vst [vmem:[#allocation2 + $0x8] sm:$0xff] (!%p1132_p6), %v1500_v8 }
  0x4d   : > { %418 = vst [vmem:[#allocation2 + $0x10] sm:$0xff] (!%p1132_p6), %v1500_v8  ;;  %419 = vst [vmem:[#allocation2 + $0x18] sm:$0xff] (!%p1132_p6), %v1500_v8 }
  0x51 PF: > { %v420_v9 = vld [vmem:[%s353_s19] sm:$0xff]  ;;  %v421_v10 = vld [vmem:[%s353_s19 + $0x8] sm:$0xff]  ;;  %v422_v11 = vld [vmem:[%s353_s19 + $0x10] sm:$0xff]  ;;  %vm578_vm0 = vcmask 261120   ;;  %v1501_v14 = vmov 0   ;;  %p1151_p7 = scmp.ne.s32.totalorder %s1474_s23, 1 }
  0x52   : > { %v424_v12 = vpack.c.bf16 %v421_v10, %v420_v9  ;;  %v423_v13 = vld [vmem:[%s353_s19 + $0x18] sm:$0xff]  ;;  %1326 = vset.pattern.permute.xlu0 %v1501_v14  ;;  %1327 = vset.pattern.permute.xlu1 %v1501_v14  ;;  %v1328_v16 = vld [vmem:[%s1685_s8] sm:$0xff]   ;;  %v1329_v17 = vld [vmem:[%s1685_s8 + $0x8] sm:$0xff]  }
  0x53   : > { %v425_v15 = vpack.c.bf16 %v423_v13, %v422_v11  ;;  %1181 = vmatprep.mubr.msk.bf16.mxu0 %vm578_vm0, %v1328_v16  ;;  %v1330_v18 = vld [vmem:[%s1685_s8 + $0x10] sm:$0xff]   ;;  %v442_v19 = vld [vmem:[%s1690_s3] sm:$0xff]  ;;  %v443_v21 = vld [vmem:[%s1690_s3 + $0x8] sm:$0xff] }
  0x54   : > { %1177 = vmatprep.subr.bf16.mxu0 %v424_v12  ;;  %v444_v20 = vld [vmem:[%s1690_s3 + $0x10] sm:$0xff]  ;;  %460 = vperm.xlu0 %1326, %v442_v19   ;;  %v445_v22 = vld [vmem:[%s1690_s3 + $0x18] sm:$0xff]  ;;  %v446_v24 = vld [vmem:[%s1690_s3 + $0x20] sm:$0xff] }
  0x55   : > { %1178 = vmatpush3.bf16.msra.mxu0 %v424_v12  ;;  %470 = vperm.xlu1 %1327, %v444_v20   ;;  %v1331_v23 = vld [vmem:[%s1685_s8 + $0x18] sm:$0xff]   ;;  %v447_v25 = vld [vmem:[%s1690_s3 + $0x28] sm:$0xff]  ;;  %v1332_v26 = vld [vmem:[%s1685_s8 + $0x20] sm:$0xff]  }
  0x56   : > { %1179 = vmatprep.subr.bf16.mxu0 %v425_v15  ;;  %v448_v27 = vld [vmem:[%s1690_s3 + $0x30] sm:$0xff]  ;;  %v449_v28 = vld [vmem:[%s1690_s3 + $0x38] sm:$0xff]  ;;  %v1333_v29 = vld [vmem:[%s1685_s8 + $0x28] sm:$0xff]  }
  0x57   : > { %v450_v30 = vld [vmem:[%s1690_s3 + $0x40] sm:$0xff]  ;;  %v451_v31 = vld [vmem:[%s1690_s3 + $0x48] sm:$0xff]  ;;  %v1334_v32 = vld [vmem:[%s1685_s8 + $0x30] sm:$0xff]  }
  0x58   : > { %465 = vperm.xlu0 %1326, %v443_v21   ;;  %v452_v33 = vld [vmem:[%s1690_s3 + $0x50] sm:$0xff]  ;;  %v453_v34 = vld [vmem:[%s1690_s3 + $0x58] sm:$0xff]  ;;  %v454_v36 = vld [vmem:[%s1690_s3 + $0x60] sm:$0xff] }
  0x59   : > { %1180 = vmatpush3.bf16.msra.mxu0 %v425_v15  ;;  %475 = vperm.xlu1 %1327, %v445_v22   ;;  %v1335_v35 = vld [vmem:[%s1685_s8 + $0x38] sm:$0xff]   ;;  %v455_v37 = vld [vmem:[%s1690_s3 + $0x68] sm:$0xff]  ;;  %v456_v38 = vld [vmem:[%s1690_s3 + $0x70] sm:$0xff] }
  0x5a   : > { %v457_v39 = vld [vmem:[%s1690_s3 + $0x78] sm:$0xff]  ;;  %v1336_v40 = vld [vmem:[%s360_s16] sm:$0xff]  }
  0x5b   : > { %1213 = vmatprep.mubr.bf16.mxu1 %v1336_v40 }
  0x5c   : > { %1182 = vmatmul.mubr.msk.bf16.vlgmr.msra.gmra.mrb[0].mxu0 %vm578_vm0, %v1329_v17  ;;  %480 = vperm.xlu0 %1326, %v446_v24  }
  0x5d   : > { %1185 = vmatprep.mubr.msk.bf16.mxu0 %vm578_vm0, %v1330_v18  ;;  %485 = vperm.xlu1 %1327, %v447_v25  }
  0x60   : > { %490 = vperm.xlu0 %1326, %v448_v27  }
  0x61   : > { %495 = vperm.xlu1 %1327, %v449_v28  }
  0x64   : > { %1186 = vmatmul.mubr.msk.bf16.gmra.mrb[4].mxu0 %vm578_vm0, %v1331_v23  ;;  %500 = vperm.xlu0 %1326, %v450_v30  }
  0x65   : > { %1189 = vmatprep.mubr.msk.bf16.mxu0 %vm578_vm0, %v1332_v26  ;;  %505 = vperm.xlu1 %1327, %v451_v31  }
  0x68   : > { %510 = vperm.xlu0 %1326, %v452_v33  }
  0x69   : > { %515 = vperm.xlu1 %1327, %v453_v34  }
  0x6c   : > { %1190 = vmatmul.mubr.msk.bf16.gmra.mrb[8].mxu0 %vm578_vm0, %v1333_v29  ;;  %520 = vperm.xlu0 %1326, %v454_v36  }
  0x6d   : > { %1193 = vmatprep.mubr.msk.bf16.mxu0 %vm578_vm0, %v1334_v32  ;;  %525 = vperm.xlu1 %1327, %v455_v37  }
  0x70   : > { %530 = vperm.xlu0 %1326, %v456_v38  }
  0x71   : > { %535 = vperm.xlu1 %1327, %v457_v39  }
  0x74   : > { %1194 = vmatmul.mubr.msk.bf16.gmra.mrb[12].mxu0 %vm578_vm0, %v1335_v35 }
  0xd3   : > { %v461_v41 = vpop.permute.xlu0 %460 }
  0xd4   : > { %v471_v42 = vpop.permute.xlu1 %470 }
  0xd7   : > { %v466_v43 = vpop.permute.xlu0 %465 }
  0xd8   : > { %v476_v44 = vpop.permute.xlu1 %475 }
  0xdb   : > { %v481_v45 = vpop.permute.xlu0 %480 }
  0xdc   : > { %v486_v46 = vpop.permute.xlu1 %485 }
  0xdf   : > { %v491_v47 = vpop.permute.xlu0 %490 }
  0xe0   : > { %v496_v51 = vpop.permute.xlu1 %495 }
  0xe3   : > { %v501_v61 = vpop.permute.xlu0 %500 }
  0xe4   : > { %v506_v2 = vpop.permute.xlu1 %505 }
  0xe7   : > { %v511_v21 = vpop.permute.xlu0 %510 }
  0xe8   : > { %v516_v29 = vpop.permute.xlu1 %515 }
 0x12f   : > { %v1183_v48 = vpop.f32.mrb[0].mxu0 }
 0x130   : > { %v646_v49 = vadd.f32 %v1183_v48, %v471_v42  ;;  %v637_v50 = vpop.f32.mrb[1].mxu0 }
 0x131   : > { %v638_v52 = vadd.f32 %v637_v50, %v461_v41  ;;  %v1184_v53 = vpop.f32.mrb[2].mxu0 }
 0x132   : > { %v718_v54 = vmul.f32 %v646_v49, %v646_v49  ;;  %v649_v55 = vadd.f32 %v1184_v53, %v476_v44  ;;  %v640_v56 = vpop.f32.mrb[3].mxu0  ;;  %v1732_v10 = vmul.f32 0.5, %v646_v49 }
 0x133   : > { %v716_v57 = vmul.f32 %v638_v52, %v638_v52  ;;  %v641_v58 = vadd.f32 %v640_v56, %v466_v43  ;;  %v1734_v15 = vmul.f32 0.5, %v638_v52  ;;  %v526_v56 = vpop.permute.xlu1 %525 }
 0x134   : > { %v734_v59 = vmul.f32 %v718_v54, %v646_v49  ;;  %v719_v60 = vmul.f32 %v649_v55, %v649_v55  ;;  %v1744_v35 = vmul.f32 0.5, %v649_v55 }
 0x135   : > { %v732_v62 = vmul.f32 %v716_v57, %v638_v52  ;;  %v717_v63 = vmul.f32 %v641_v58, %v641_v58  ;;  %v1746_v39 = vmul.f32 0.5, %v641_v58 }
 0x136   : > { %v750_v0 = vmul.f32 0.044715, %v734_v59  ;;  %v735_v1 = vmul.f32 %v719_v60, %v649_v55 }
 0x137   : > { %v748_v3 = vmul.f32 0.044715, %v732_v62  ;;  %v733_v4 = vmul.f32 %v717_v63, %v641_v58  ;;  %v1187_v5 = vpop.f32.mrb[4].mxu0 }
 0x138   : > { %v766_v6 = vadd.f32 %v750_v0, %v646_v49  ;;  %v751_v7 = vmul.f32 0.044715, %v735_v1  ;;  %v1730_v8 = vadd.f32 %v1187_v5, %v491_v47  ;;  %v653_v9 = vpop.f32.mrb[5].mxu0 }
 0x139   : > { %v764_v11 = vadd.f32 %v748_v3, %v638_v52  ;;  %v749_v12 = vmul.f32 0.044715, %v733_v4  ;;  %v654_v13 = vadd.f32 %v653_v9, %v481_v45  ;;  %v1188_v14 = vpop.f32.mrb[6].mxu0  ;;  %v521_v45 = vpop.permute.xlu0 %520 }
 0x13a   : > { %v782_v16 = vmul.f32 0.7978846, %v766_v6  ;;  %v767_v17 = vadd.f32 %v751_v7, %v649_v55  ;;  %v722_v18 = vmul.f32 %v1730_v8, %v1730_v8  ;;  %v1738_v19 = vadd.f32 %v1188_v14, %v496_v51  ;;  %v656_v20 = vpop.f32.mrb[7].mxu0 }
 0x13b   : > { %v765_v22 = vadd.f32 %v749_v12, %v641_v58  ;;  %v720_v23 = vmul.f32 %v654_v13, %v654_v13  ;;  %v657_v24 = vadd.f32 %v656_v20, %v486_v46  ;;  %v780_v25 = vmul.f32 0.7978846, %v764_v11 }
 0x13c   : > { %1338 = vtanh.f32 %v782_v16  ;;  %v783_v26 = vmul.f32 0.7978846, %v767_v17  ;;  %v738_v27 = vmul.f32 %v722_v18, %v1730_v8  ;;  %v723_v28 = vmul.f32 %v1738_v19, %v1738_v19 }
 0x13d   : > { %v736_v30 = vmul.f32 %v720_v23, %v654_v13  ;;  %v721_v31 = vmul.f32 %v657_v24, %v657_v24  ;;  %v781_v32 = vmul.f32 0.7978846, %v765_v22  ;;  %1340 = vtanh.f32 %v780_v25  ;;  %v531_v9 = vpop.permute.xlu0 %530  ;;  %v536_v23 = vpop.permute.xlu1 %535 }
 0x13e   : > { %1342 = vtanh.f32 %v783_v26  ;;  %v754_v33 = vmul.f32 0.044715, %v738_v27  ;;  %v739_v34 = vmul.f32 %v723_v28, %v1738_v19  ;;  %v1748_v40 = vmul.f32 0.5, %v654_v13 }
 0x13f   : > { %v752_v36 = vmul.f32 0.044715, %v736_v30  ;;  %v737_v37 = vmul.f32 %v721_v31, %v657_v24  ;;  %v1191_v38 = vpop.f32.mrb[8].mxu0  ;;  %1344 = vtanh.f32 %v781_v32  ;;  %v1755_v50 = vmul.f32 0.5, %v657_v24 }
 0x140   : > { %v770_v41 = vadd.f32 %v754_v33, %v1730_v8  ;;  %v755_v42 = vmul.f32 0.044715, %v739_v34  ;;  %v1751_v43 = vadd.f32 %v1191_v38, %v511_v21  ;;  %v669_v44 = vpop.f32.mrb[9].mxu0  ;;  %v1774_v6 = vmul.f32 0.5, %v1730_v8 }
 0x141   : > { %v768_v46 = vadd.f32 %v752_v36, %v654_v13  ;;  %v753_v47 = vmul.f32 0.044715, %v737_v37  ;;  %v1753_v48 = vadd.f32 %v669_v44, %v501_v61  ;;  %v1192_v49 = vpop.f32.mrb[10].mxu0 }
 0x142   : > { %v786_v51 = vmul.f32 0.7978846, %v770_v41  ;;  %v771_v52 = vadd.f32 %v755_v42, %v1738_v19  ;;  %v726_v53 = vmul.f32 %v1751_v43, %v1751_v43  ;;  %v1760_v54 = vadd.f32 %v1192_v49, %v516_v29  ;;  %v672_v55 = vpop.f32.mrb[11].mxu0 }
 0x143   : > { %v784_v57 = vmul.f32 0.7978846, %v768_v46  ;;  %v769_v58 = vadd.f32 %v753_v47, %v657_v24  ;;  %v724_v59 = vmul.f32 %v1753_v48, %v1753_v48  ;;  %v1764_v60 = vadd.f32 %v672_v55, %v506_v2 }
 0x144   : > { %1346 = vtanh.f32 %v786_v51  ;;  %v787_v61 = vmul.f32 0.7978846, %v771_v52  ;;  %v742_v62 = vmul.f32 %v726_v53, %v1751_v43  ;;  %v727_v63 = vmul.f32 %v1760_v54, %v1760_v54 }
 0x145   : > { %1348 = vtanh.f32 %v784_v57  ;;  %v785_v0 = vmul.f32 0.7978846, %v769_v58  ;;  %v740_v1 = vmul.f32 %v724_v59, %v1753_v48  ;;  %v725_v3 = vmul.f32 %v1764_v60, %v1764_v60 }
 0x146   : > { %v1339_v4 = vpop.eup %1338  ;;  %1350 = vtanh.f32 %v787_v61  ;;  %v758_v5 = vmul.f32 0.044715, %v742_v62  ;;  %v743_v2 = vmul.f32 %v727_v63, %v1760_v54 }
 0x147   : > { %v1341_v7 = vpop.eup %1340  ;;  %1352 = vtanh.f32 %v785_v0  ;;  %v756_v11 = vmul.f32 0.044715, %v740_v1  ;;  %v741_v12 = vmul.f32 %v725_v3, %v1764_v60  ;;  %v1195_v13 = vpop.f32.mrb[12].mxu0  ;;  %v814_v14 = vadd.f32 1.0, %v1339_v4 }
 0x148   : > { %v1343_v16 = vpop.eup %1342  ;;  %v774_v17 = vadd.f32 %v758_v5, %v1751_v43  ;;  %v759_v18 = vmul.f32 0.044715, %v743_v2  ;;  %v1778_v20 = vadd.f32 %v1195_v13, %v531_v9  ;;  %v685_v21 = vpop.f32.mrb[13].mxu0  ;;  %v812_v22 = vadd.f32 1.0, %v1341_v7 }
 0x149   : > { %v772_v8 = vadd.f32 %v756_v11, %v1753_v48  ;;  %v757_v24 = vmul.f32 0.044715, %v741_v12  ;;  %v1781_v25 = vadd.f32 %v685_v21, %v521_v45  ;;  %v1196_v26 = vpop.f32.mrb[14].mxu0  ;;  %v815_v27 = vadd.f32 1.0, %v1343_v16  ;;  %v1345_v28 = vpop.eup %1344 }
 0x14a   : > { %v790_v29 = vmul.f32 0.7978846, %v774_v17  ;;  %v775_v30 = vadd.f32 %v759_v18, %v1760_v54  ;;  %v730_v31 = vmul.f32 %v1778_v20, %v1778_v20  ;;  %v1786_v32 = vadd.f32 %v1196_v26, %v536_v23  ;;  %v688_v33 = vpop.f32.mrb[15].mxu0 }
 0x14b   : > { %v788_v34 = vmul.f32 0.7978846, %v772_v8  ;;  %v773_v36 = vadd.f32 %v757_v24, %v1764_v60  ;;  %v728_v37 = vmul.f32 %v1781_v25, %v1781_v25  ;;  %v1791_v38 = vadd.f32 %v688_v33, %v526_v56 }
 0x14c   : > { %1354 = vtanh.f32 %v790_v29  ;;  %v791_v41 = vmul.f32 0.7978846, %v775_v30  ;;  %v746_v42 = vmul.f32 %v730_v31, %v1778_v20  ;;  %v731_v44 = vmul.f32 %v1786_v32, %v1786_v32 }
 0x14d   : > { %1356 = vtanh.f32 %v788_v34  ;;  %v789_v45 = vmul.f32 0.7978846, %v773_v36  ;;  %v744_v46 = vmul.f32 %v728_v37, %v1781_v25  ;;  %v729_v47 = vmul.f32 %v1791_v38, %v1791_v38 }
 0x14e   : > { %v1347_v49 = vpop.eup %1346  ;;  %1358 = vtanh.f32 %v791_v41  ;;  %v762_v51 = vmul.f32 0.044715, %v746_v42  ;;  %v747_v52 = vmul.f32 %v731_v44, %v1786_v32  ;;  %v813_v53 = vadd.f32 1.0, %v1345_v28 }
 0x14f   : > { %v1349_v55 = vpop.eup %1348  ;;  %1360 = vtanh.f32 %v789_v45  ;;  %v760_v56 = vmul.f32 0.044715, %v744_v46  ;;  %v745_v57 = vmul.f32 %v729_v47, %v1791_v38  ;;  %v828_v58 = vmul.f32 %v812_v22, %v1734_v15 }
 0x150   : > { %v1351_v59 = vpop.eup %1350  ;;  %v778_v61 = vadd.f32 %v762_v51, %v1778_v20  ;;  %v763_v62 = vmul.f32 0.044715, %v747_v52  ;;  %v829_v63 = vmul.f32 %v813_v53, %v1746_v39  ;;  %v830_v0 = vmul.f32 %v814_v14, %v1732_v10 }
 0x151   : > { %v1353_v1 = vpop.eup %1352  ;;  %v776_v3 = vadd.f32 %v760_v56, %v1781_v25  ;;  %v761_v4 = vmul.f32 0.044715, %v745_v57  ;;  %v831_v5 = vmul.f32 %v815_v27, %v1744_v35  ;;  %v816_v2 = vadd.f32 1.0, %v1349_v55 }
 0x152   : > { %v794_v7 = vmul.f32 0.7978846, %v778_v61  ;;  %v779_v9 = vadd.f32 %v763_v62, %v1786_v32  ;;  %v852_v11 = vpack.c.bf16 %v829_v63, %v828_v58  ;;  %v817_v15 = vadd.f32 1.0, %v1353_v1 }
 0x153   : > { %v792_v12 = vmul.f32 0.7978846, %v776_v3  ;;  %v777_v13 = vadd.f32 %v761_v4, %v1791_v38  ;;  %v853_v16 = vpack.c.bf16 %v831_v5, %v830_v0  ;;  %v832_v39 = vmul.f32 %v816_v2, %v1748_v40  ;;  %v847_v0 = vld [vmem:[#allocation2 + $0x18] sm:$0xff]  ;;  %v845_v4 = vld [vmem:[#allocation2 + $0x8] sm:$0xff] }
 0x154   : > { %1362 = vtanh.f32 %v794_v7  ;;  %v795_v10 = vmul.f32 0.7978846, %v779_v9  ;;  %1197 = vmatprep.subr.bf16.mxu1 %v852_v11  ;;  %v833_v14 = vmul.f32 %v817_v15, %v1755_v50  ;;  %v818_v17 = vadd.f32 1.0, %v1347_v49  ;;  %v939_v15 = vld [vmem:[%s1920_s4 + $0x10] sm:$0xff] (!%p1151_p7) }
 0x155   : > { %1364 = vtanh.f32 %v792_v12  ;;  %v793_v35 = vmul.f32 0.7978846, %v777_v13  ;;  %1198 = vmatpush3.bf16.msra.mxu1 %v852_v11  ;;  %v707_v18 = vmul.f32 0.5, %v1738_v19  ;;  %v819_v21 = vadd.f32 1.0, %v1351_v59  ;;  %v937_v12 = vld [vmem:[%s1920_s4] sm:$0xff] (!%p1151_p7) }
 0x156   : > { %v1355_v22 = vpop.eup %1354  ;;  %1366 = vtanh.f32 %v795_v10  ;;  %1199 = vmatprep.subr.bf16.mxu1 %v853_v16  ;;  %v854_v23 = vpack.c.bf16 %v833_v14, %v832_v39  ;;  %v834_v40 = vmul.f32 %v818_v17, %v1774_v6  ;;  %v710_v30 = vmul.f32 0.5, %v1751_v43  ;;  %v938_v39 = vld [vmem:[%s1920_s4 + $0x8] sm:$0xff] (!%p1151_p7) }
 0x157   : > { %v1357_v8 = vpop.eup %1356  ;;  %1368 = vtanh.f32 %v793_v35  ;;  %v835_v24 = vmul.f32 %v819_v21, %v707_v18  ;;  %v822_v26 = vadd.f32 1.0, %v1355_v22  ;;  %v711_v19 = vmul.f32 0.5, %v1760_v54 }
 0x158   : > { %v1359_v27 = vpop.eup %1358  ;;  %v820_v28 = vadd.f32 1.0, %v1357_v8  ;;  %v708_v33 = vmul.f32 0.5, %v1753_v48  ;;  %v709_v34 = vmul.f32 0.5, %v1764_v60  ;;  %v714_v48 = vmul.f32 0.5, %v1778_v20  ;;  %v1337_v20 = vld [vmem:[%s360_s16 + $0x8] sm:$0xff]  }
 0x159   : > { %v1361_v50 = vpop.eup %1360  ;;  %1200 = vmatpush3.bf16.msra.mxu1 %v853_v16  ;;  %v855_v29 = vpack.c.bf16 %v835_v24, %v834_v40  ;;  %v823_v31 = vadd.f32 1.0, %v1359_v27  ;;  %v838_v37 = vmul.f32 %v822_v26, %v710_v30  ;;  %v715_v60 = vmul.f32 0.5, %v1786_v32  ;;  %v844_v32 = vld [vmem:[#allocation2] sm:$0xff]  ;;  %v940_v16 = vld [vmem:[%s1920_s4 + $0x18] sm:$0xff] (!%p1151_p7) }
 0x15a   : > { %1201 = vmatprep.subr.bf16.mxu1 %v854_v23  ;;  %v821_v36 = vadd.f32 1.0, %v1361_v50  ;;  %v836_v41 = vmul.f32 %v820_v28, %v708_v33  ;;  %v712_v53 = vmul.f32 0.5, %v1781_v25  ;;  %v713_v55 = vmul.f32 0.5, %v1791_v38  ;;  %v846_v25 = vld [vmem:[#allocation2 + $0x10] sm:$0xff] }
 0x15b   : > { %v839_v6 = vmul.f32 %v823_v31, %v711_v19  ;;  %v1502_v13 = vmov (!%p1151_p7), 0  }
 0x15c   : > { %v837_v42 = vmul.f32 %v821_v36, %v709_v34  ;;  %1371 = vset.pattern.permute.xlu1 (!%p1151_p7), %v1502_v13  ;;  %1370 = vset.pattern.permute.xlu0 (!%p1151_p7), %v1502_v13 }
 0x15d   : > { %1202 = vmatpush3.bf16.msra.mxu1 %v854_v23  ;;  %v857_v44 = vpack.c.bf16 %v839_v6, %v838_v37  ;;  %953 = vperm.xlu1 (!%p1151_p7), %1371, %v939_v15  }
 0x15e   : > { %v1363_v45 = vpop.eup %1362  ;;  %1203 = vmatprep.subr.bf16.mxu1 %v855_v29  ;;  %v856_v46 = vpack.c.bf16 %v837_v42, %v836_v41  ;;  %943 = vperm.xlu0 (!%p1151_p7), %1370, %v937_v12  }
 0x15f   : > { %v1365_v47 = vpop.eup %1364  ;;  %v826_v43 = vadd.f32 1.0, %v1363_v45 }
 0x160   : > { %v1367_v49 = vpop.eup %1366  ;;  %v824_v54 = vadd.f32 1.0, %v1365_v47 }
 0x161   : > { %v1369_v51 = vpop.eup %1368  ;;  %1204 = vmatpush3.bf16.msra.mxu1 %v855_v29  ;;  %v827_v52 = vadd.f32 1.0, %v1367_v49  ;;  %v842_v57 = vmul.f32 %v826_v43, %v714_v48  ;;  %958 = vperm.xlu1 (!%p1151_p7), %1371, %v940_v16  }
 0x162   : > { %1205 = vmatprep.subr.bf16.mxu1 %v856_v46  ;;  %v825_v56 = vadd.f32 1.0, %v1369_v51  ;;  %v840_v59 = vmul.f32 %v824_v54, %v712_v53  ;;  %948 = vperm.xlu0 (!%p1151_p7), %1370, %v938_v39  }
 0x163   : > { %v843_v58 = vmul.f32 %v827_v52, %v715_v60 }
 0x164   : > { %v841_v61 = vmul.f32 %v825_v56, %v713_v55 }
 0x165   : > { %1206 = vmatpush3.bf16.msra.mxu1 %v856_v46  ;;  %v859_v62 = vpack.c.bf16 %v843_v58, %v842_v57 }
 0x166   : > { %1207 = vmatprep.subr.bf16.mxu1 %v857_v44  ;;  %v858_v63 = vpack.c.bf16 %v841_v61, %v840_v59 }
 0x169   : > { %1208 = vmatpush3.bf16.msra.mxu1 %v857_v44 }
 0x16a   : > { %1209 = vmatprep.subr.bf16.mxu1 %v858_v63 }
 0x16d   : > { %1210 = vmatpush3.bf16.msra.mxu1 %v858_v63 }
 0x16e   : > { %1211 = vmatprep.subr.bf16.mxu1 %v859_v62 }
 0x171   : > { %1212 = vmatpush3.bf16.msra.mxu1 %v859_v62 }
 0x174   : > { %1214 = vmatmul.mubr.bf16.vlgmr.msra.gmra.mrb[0].mxu1 %v1337_v20 }
 0x1dc   : > { %v954_v17 = vpop.permute.xlu1 (!%p1151_p7), %953 }
 0x1dd   : > { %v944_v35 = vpop.permute.xlu0 (!%p1151_p7), %943 }
 0x1e0   : > { %v959_v8 = vpop.permute.xlu1 (!%p1151_p7), %958 }
 0x1e1   : > { %v949_v40 = vpop.permute.xlu0 (!%p1151_p7), %948 }
 0x247   : > { %v1215_v38 = vpop.f32.mrb[0].mxu1  ;;  %932 = sbr.rel (%p1151_p7) target bundleno = 600 (0x258), region = 127 }
 0x248   : > { %v923_v1 = vadd.f32 %v1215_v38, %v846_v25  ;;  %v906_v3 = vpop.f32.mrb[1].mxu1 }
 0x249   : > { %v921_v5 = vadd.f32 %v906_v3, %v844_v32  ;;  %v1216_v2 = vpop.f32.mrb[2].mxu1 }
 0x24a   : > { %927 = vst [vmem:[#allocation2 + $0x10] sm:$0xff] %v923_v1  ;;  %v924_v7 = vadd.f32 %v1216_v2, %v847_v0  ;;  %v909_v9 = vpop.f32.mrb[3].mxu1 }
 0x24b   : > { %925 = vst [vmem:[#allocation2] sm:$0xff] %v921_v5  ;;  %v922_v11 = vadd.f32 %v909_v9, %v845_v4 }
 0x24c   : > { %928 = vst [vmem:[#allocation2 + $0x18] sm:$0xff] %v924_v7 }
 0x24d   : > { %926 = vst [vmem:[#allocation2 + $0x8] sm:$0xff] %v922_v11 }
 0x251   : > { %v935_v10 = vld [vmem:[#allocation2 + $0x10] sm:$0xff] }
 0x252   : > { %v933_v14 = vld [vmem:[#allocation2] sm:$0xff]  ;;  %v963_v18 = vadd.f32 %v954_v17, %v935_v10 }
 0x253   : > { %v961_v21 = vadd.f32 %v944_v35, %v933_v14  ;;  %v936_v22 = vld [vmem:[#allocation2 + $0x18] sm:$0xff] }
 0x254   : > { %v934_v23 = vld [vmem:[#allocation2 + $0x8] sm:$0xff]  ;;  %967 = vst [vmem:[%s1693_s30 + $0x10] sm:$0xff] %v963_v18  ;;  %v964_v24 = vadd.f32 %v959_v8, %v936_v22 }
 0x255   : > { %965 = vst [vmem:[%s1693_s30] sm:$0xff] %v961_v21  ;;  %v962_v26 = vadd.f32 %v949_v40, %v934_v23 }
 0x256   : > { %968 = vst [vmem:[%s1693_s30 + $0x18] sm:$0xff] %v964_v24 }
 0x257   : > { %966 = vst [vmem:[%s1693_s30 + $0x8] sm:$0xff] %v962_v26 }
 0x258 PF: > { %s1153_s12 = sshll.u32 %s1482_s25, 3  ;;  %s984_s6 = sshll.u32 %s1693_s30, 4  ;;  %s1843_s6 = int_to_ptr.vmem [resolvable:$true] %s984_s6 }
 0x259   : > { %s981_s15 = sadd.s32 %s1478_s24, %s1153_s12  ;;  %s1940_s3 = sand.u32 1, %s1466_s21  }
 0x25a   : > { %s1154_s8 = sshll.u32 %s981_s15, 7  ;;  %s1852_s16 = scalar_lea.sflag [#allocation6], %s1940_s3 }
 0x25b   : > { %s1848_s0 = scalar_lea.hbm %s1921_s5, %s1154_s8  ;;  %s1372_s11 = scalar_lea.vmem %s1843_s6, 512 }
 0x25c   : > { %p1373_p8 = scmp.ne.s32.totalorder %s1843_s6, %s1372_s11  ;;  %s1503_s24 = smov [#allocation5]  }
 0x25d   : > { %s1376_s25 = sshll.u32 %s1503_s24, 4  ;;  %s1377_s25 = int_to_ptr.vmem [resolvable:$false] %s1376_s25 }
 0x25e   : > { %p1374_p9 = pnand %p1373_p8, %p1642_p10  ;;  %s1378_s30 = scalar_lea.vmem %s1377_s25, 1024 }
 0x25f   : > { %p1379_p12 = scmp.lt.s32.totalorder %s1843_s6, %s1377_s25  ;;  %p1380_p13 = scmp.lt.s32.totalorder %s1378_s30, %s1372_s11 }
 0x260   : > { %p1375_p11 = pneg %p1374_p9 }
 0x261   : > { %p1381_p2 = por %p1380_p13, %p1379_p12 }
 0x263   : > { %p1382_p1 = pnand %p1381_p2, %p1375_p11 }
 0x265   : > { %1385 = shalt.err (!%p1382_p1)
}
 0x266   : > { %s1386_s10 = scalar_lea.hbm %s1848_s0, 512  ;;  %s1390_s9 = scalar_lea.hbm %s1921_s5, 2048 }
 0x267   : > { %p1387_p3 = scmp.ne.s32.totalorder %s1848_s0, %s1386_s10  ;;  %p1391_p6 = scmp.lt.u32.totalorder %s1848_s0, %s1921_s5 }
 0x268   : > { %p1392_p7 = scmp.lt.u32.totalorder %s1390_s9, %s1386_s10  ;;  %p1394_p9 = scmp.lt.u32.totalorder %s1386_s10, %s1848_s0 }
 0x269   : > { %p1388_p4 = pnand %p1387_p3, %p1642_p10 }
 0x26a   : > { %p1393_p8 = por %p1392_p7, %p1391_p6 }
 0x26b   : > { %p1389_p5 = pneg %p1388_p4 }
 0x26c   : > { %p1395_p11 = por %p1394_p9, %p1393_p8 }
 0x26e   : > { %p1396_p12 = pnand %p1395_p11, %p1389_p5 }
 0x270   : > { %1399 = shalt.err (!%p1396_p12)
}
 0x271   : > { %s1504_s8 = smov 128   ;;  %s1505_s14 = smov 256  }
 0x272   : > { %s1506_s19 = smov 8  }
 0x273   : > { %1217 = dma.vmem_to_hbm [thread:$0]  (%p1642_p10), %s1843_s6, 512, %s1848_s0, %s1852_s16, %s1504_s8, %s1505_s14, %s1506_s19  }
 0x274 PF: > { %p1223_p13 = scmp.ge.s32.totalorder %s1498_s29, 2  ;;  %s999_s11 = sand.u32 1, %s1454_s18  }
 0x275   : > { %s1000_s24 = scalar_lea.sflag [#allocation6], %s999_s11 }
 0x276   : > { %p1220_p2 = pnand %p1223_p13, %p1650_p0 }
 0x278   : > { %1449 = dma.done.wait (!%p1220_p2), %s1000_s24, 512  }
 0x279   : > { %1451 = vsyncadd (!%p1220_p2), %s1000_s24, 4294966784  ;;  %s18_s29 = sadd.s32 1, %s1498_s29   ;;  %s1942_s25 = sld [smem:[#allocation10_spill]] }
 0x27a   : > { %p15_p1 = scmp.ge.s32.totalorder %s18_s29, 10   ;;  %s1943_s17 = sld [smem:[#allocation8_spill]] }
 0x27b   : > { %s1944_s6 = sld [smem:[#allocation9_spill]]  ;;  %s1945_s0 = sld [smem:[#allocation11_spill]] }
 0x27c   : > { %s1946_s18 = smov %s1466_s21  ;;  %s1947_s19 = smov %s1462_s20 }
 0x27d   : > { %s1949_s21 = smov %s1470_s22  ;;  %s1950_s22 = smov %s1655_s13 }
 0x27e   : > { %s1951_s23 = smov %s1486_s26  ;;  %s1952_s24 = smov %s1490_s27 }
 0x27f   : > { %s1948_s20 = smov %s1942_s25  ;;  %s1953_s25 = smov %s1494_s28 }
 0x280   : > { %s1954_s26 = smov %s1943_s17  ;;  %17 = sbr.rel (!%p15_p1) target bundleno = 10 (0xa), region = 181 }
 0x281   : > { %s1955_s27 = smov %s1944_s6  ;;  %s1956_s28 = smov %s1945_s0 }
 0x287   :  { %1005 = vsyncpa [#allocation6], 1 }
 0x288   :  { %1007 = vsyncpa [#allocation6 + $0x1], 1 }

</bundles_post_ra>
